<compile_context>
chip_gen: v7x
topology: tpu7x:2x2x1
jax: 0.10.0
libtpu: 0.0.40
codegen_flags: <defaults>
</compile_context>

<pallas_src>
import math

import jax
import jax.numpy as jnp
from jax.experimental import pallas as pl
from jax.experimental.pallas import tpu as pltpu

LN_EPS = 1e-12


def _freq_ln_kernel(x_ref, filt_ref, g1_ref, g1t_ref, consts_ref, o_ref):
    # x_ref:      (S, Nt)   input lane tile; lanes index (batch-row, hidden)
    # filt_ref:   (S, S)    low-pass DFT filter (bf16 fast path / f32 exact)
    # g1_ref:     (Nt, Gp)  group-mean reduce matrix (value 1/H inside group)
    # g1t_ref:    (Gp, Nt)  group broadcast matrix (value 1 inside group)
    # consts_ref: (8, Nt)   row 0: 1-b^2, row 1: 1+b^2, row 2: gamma, row 3: bias
    # o_ref:      (S, Nt)   output tile
    S = x_ref.shape[0]
    cdt = filt_ref.dtype                                # MXU operand dtype
    x_in = x_ref[...]
    x = x_in.astype(jnp.float32)

    # Low-pass along seq: one lane-dense MXU matmul, f32 accumulation.
    low = jnp.dot(filt_ref[...], x_in.astype(cdt),
                  preferred_element_type=jnp.float32)   # (S, Nt)

    c_low = consts_ref[0:1, :]
    c_x = consts_ref[1:2, :]
    gamma = consts_ref[2:3, :]
    bias = consts_ref[3:4, :]

    # Fused mix + residual: low + b^2*(x-low) + x == (1-b^2)*low + (1+b^2)*x
    y = c_low * low + c_x * x                           # (S, Nt) f32

    # Per-(batch-row) LayerNorm statistics: one skinny reduce matmul for mean
    # and E[y^2] together, group-level rsqrt, one skinny broadcast back.
    ys = jnp.concatenate([y, y * y], axis=0)            # (2S, Nt)
    stats = jnp.dot(ys.astype(cdt), g1_ref[...],
                    preferred_element_type=jnp.float32)  # (2S, Gp)
    m_g = stats[:S, :]
    ex2_g = stats[S:, :]
    var_g = jnp.maximum(ex2_g - m_g * m_g, 0.0)          # guard cancellation
    inv_g = jax.lax.rsqrt(var_g + LN_EPS)                # (S, Gp): EUP work / H
    mb = jnp.concatenate([m_g, inv_g], axis=0)           # (2S, Gp)
    bcast = jnp.dot(mb.astype(cdt), g1t_ref[...],
                    preferred_element_type=jnp.float32)  # (2S, Nt)
    m_full = bcast[:S, :]
    inv_full = bcast[S:, :]

    o_ref[...] = ((y - m_full) * inv_full * gamma + bias).astype(o_ref.dtype)


def make_lowpass_filter(seq_len: int, c_cut: int,
                        dtype=jnp.bfloat16) -> jnp.ndarray:
    """(S, S) matrix F with F @ x == irfft(mask * rfft(x, norm='ortho'),
    n=seq_len, norm='ortho') applied along the seq axis."""
    eye = jnp.eye(seq_len, dtype=jnp.float32)
    freq = jnp.fft.rfft(eye, axis=0, norm="ortho")              # (S//2+1, S)
    mask = (jnp.arange(seq_len // 2 + 1) < c_cut)[:, None]
    filt = jnp.fft.irfft(freq * mask, n=seq_len, axis=0, norm="ortho")
    return filt.astype(dtype)                                   # (S, S)


def _round_up(a: int, b: int) -> int:
    return (a + b - 1) // b * b


def _choose_tiling(B: int, H: int, target_lanes: int):
    """Pick Bb (batch rows folded into lanes per grid step) and n_tiles."""
    g = math.lcm(H, 128) // H                    # batch rows per 128-lane unit
    want = max(g, (max(target_lanes, 128) // H) // g * g)
    bb = min(want, _round_up(B, g))
    n = _round_up(B, bb) // bb
    # v7x has 2 TensorCores: prefer an even number of grid steps so the
    # "parallel" axis splits across both, but never shrink the lane tile below
    # half the target (per-step-overhead amortization wins otherwise).
    if n % 2 == 1 and bb > g:
        cand = bb - g
        floor = max(g, bb // 2)
        while cand >= floor:
            nc = _round_up(B, cand) // cand
            if nc % 2 == 0:
                bb, n = cand, nc
                break
            cand -= g
    return bb, n


def _build_freq_call(S, Nt, Gp, n_tiles, x_dtype, filt_dtype, out_dtype):
    N_pad = Nt * n_tiles
    xb = jnp.dtype(x_dtype).itemsize
    fb = jnp.dtype(filt_dtype).itemsize
    ob = jnp.dtype(out_dtype).itemsize
    f32b = 4

    in_specs = [
        pl.BlockSpec((S, Nt), lambda t: (0, t)),     # x (lane-dense tile)
        pl.BlockSpec((S, S), lambda t: (0, 0)),      # low-pass filter
        pl.BlockSpec((Nt, Gp), lambda t: (0, 0)),    # group reduce matrix
        pl.BlockSpec((Gp, Nt), lambda t: (0, 0)),    # group broadcast matrix
        pl.BlockSpec((8, Nt), lambda t: (0, 0)),     # packed per-lane constants
    ]
    out_specs = pl.BlockSpec((S, Nt), lambda t: (0, t))

    # VMEM: double-buffered x/out tiles + constant blocks + f32 temporaries.
    const_bytes = S * S * fb + 2 * Nt * Gp * fb + 8 * Nt * f32b
    vmem_est = 2 * S * Nt * (xb + ob) + 2 * const_bytes + 10 * S * Nt * f32b
    # Cap well below v7x's 64 MiB physical VMEM (Mosaic scratch headroom);
    # v5e/v6e (128 MiB) are comfortably within this as well.
    vmem_limit = int(min(48 << 20, max(16 << 20, 2 * vmem_est)))

    cost = pl.CostEstimate(
        flops=(2 * S * S * N_pad                        # low-pass matmul
               + 2 * (2 * S) * Nt * Gp * n_tiles        # stats reduce
               + 2 * (2 * S) * Gp * Nt * n_tiles        # stats broadcast
               + 10 * S * N_pad),                       # elementwise mix / LN
        transcendentals=S * Gp * n_tiles,               # group-level rsqrt
        bytes_accessed=S * N_pad * (xb + ob) + const_bytes,
    )

    return pl.pallas_call(
        _freq_ln_kernel,
        out_shape=jax.ShapeDtypeStruct((S, N_pad), out_dtype),
        grid_spec=pltpu.PrefetchScalarGridSpec(
            num_scalar_prefetch=0,
            grid=(n_tiles,),
            in_specs=in_specs,
            out_specs=out_specs,
        ),
        compiler_params=pltpu.CompilerParams(
            dimension_semantics=("parallel",),
            vmem_limit_bytes=vmem_limit,
        ),
        cost_estimate=cost,
    )


def frequency_layer_lane_major(x_t, hidden_size, filt, beta, ln_weight,
                               ln_bias, *, out_dtype=None, target_lanes=1024):
    """BSARec FrequencyLayer forward on the lane-major layout (eval mode).

    x_t: (S, B*hidden_size), lane n = b*hidden_size + h (seq along rows).
    filt: (S, S) low-pass DFT filter; its dtype (bf16/f32) also selects the
    MXU operand dtype for the LayerNorm statistics matmuls.
    beta: scalar or (hidden_size,). Returns (S, B*hidden_size) in out_dtype
    (default x_t.dtype)."""
    S, N = x_t.shape
    H = hidden_size
    assert N % H == 0, "lane width must be a multiple of hidden_size"
    B = N // H
    out_dtype = x_t.dtype if out_dtype is None else out_dtype

    beta = jnp.asarray(beta, jnp.float32).reshape(-1)
    if beta.shape[0] == 1:
        beta = jnp.broadcast_to(beta, (H,))
    beta2 = beta * beta

    Bb, n_tiles = _choose_tiling(B, H, target_lanes)
    B_pad = Bb * n_tiles
    Nt = Bb * H
    Gp = _round_up(Bb, 8)          # group columns padded to a sublane tile
    S_pad = _round_up(S, 8)        # sublane-aligned seq (MXU occupancy, v6e+)

    x_p = jnp.pad(x_t, ((0, S_pad - S), (0, (B_pad - B) * H)))
    filt_p = jnp.pad(jnp.asarray(filt), ((0, S_pad - S), (0, S_pad - S)))

    def tile_vec(v):
        return jnp.tile(jnp.asarray(v, jnp.float32).reshape(1, H), (1, Bb))

    consts = jnp.concatenate(
        [tile_vec(1.0 - beta2), tile_vec(1.0 + beta2),
         tile_vec(ln_weight), tile_vec(ln_bias),
         jnp.zeros((4, Nt), jnp.float32)], axis=0)                  # (8, Nt)

    # Factored group-mean: reduce with 1/H weights, broadcast with 1s.
    sel = jnp.kron(jnp.eye(Bb, dtype=jnp.float32),
                   jnp.ones((H, 1), jnp.float32))                   # (Nt, Bb)
    g1 = jnp.pad(sel / H, ((0, 0), (0, Gp - Bb))).astype(filt_p.dtype)
    g1t = jnp.pad(sel.T, ((0, Gp - Bb), (0, 0))).astype(filt_p.dtype)

    call = _build_freq_call(S_pad, Nt, Gp, n_tiles, x_p.dtype,
                            filt_p.dtype, out_dtype)
    out_p = call(x_p, filt_p, g1, g1t, consts)
    return out_p[:S, :N]


def frequency_layer(x, filt, beta, ln_weight, ln_bias, *, out_dtype=None,
                    target_lanes=1024):
    """FrequencyLayer forward on (B, S, H) input (eval mode; dropout = id).

    The (B,S,H) <-> (S,B*H) transposes here are pure layout plumbing (an extra
    HBM pass each); in a fused BSARec block the upstream op should emit the
    lane-major layout and call frequency_layer_lane_major directly."""
    # TODO(synk): internalize the layout change with per-batch DMA gather /
    # scatter (memory_space=pl.ANY) so the extra HBM transpose passes vanish
    # even for (B, S, H) producers.
    B, S, H = x.shape
    x_t = jnp.transpose(x, (1, 0, 2)).reshape(S, B * H)
    out_t = frequency_layer_lane_major(x_t, H, filt, beta, ln_weight, ln_bias,
                                       out_dtype=out_dtype,
                                       target_lanes=target_lanes)
    return out_t.reshape(S, B, H).transpose(1, 0, 2)


def reference_frequency_layer(x, c_cut, beta, ln_weight, ln_bias):
    """Pure-JAX reference mirroring the PyTorch forward (eval mode)."""
    B, S, H = x.shape
    f = jnp.fft.rfft(x, axis=1, norm="ortho")
    mask = (jnp.arange(S // 2 + 1) < c_cut)[None, :, None]
    low = jnp.fft.irfft(f * mask, n=S, axis=1, norm="ortho")
    beta = jnp.broadcast_to(jnp.asarray(beta, jnp.float32).reshape(-1), (H,))
    high = x - low
    emb = low + (beta.reshape(1, 1, -1) ** 2) * high
    y = emb + x
    mean = jnp.mean(y, axis=-1, keepdims=True)
    var = jnp.mean((y - mean) ** 2, axis=-1, keepdims=True)
    return (y - mean) / jnp.sqrt(var + LN_EPS) * ln_weight.reshape(1, 1, -1) \
        + ln_bias.reshape(1, 1, -1)


if __name__ == "__main__":
    # Module hyperparameters (synthetic, deterministic). hidden=64 is the
    # BSARec-typical size; with batch=2 the folded lane axis is exactly 128.
    batch, seq_len, hidden = 2, 8, 64
    c_param = 5                       # module config value
    c_cut = c_param // 2 + 1          # self.c = c // 2 + 1

    key = jax.random.PRNGKey(0)
    kx, kb, kw, kbias = jax.random.split(key, 4)
    x = jax.random.normal(kx, (batch, seq_len, hidden), dtype=jnp.float32)
    beta_vec = jax.random.normal(kb, (hidden,), dtype=jnp.float32)  # beta < -1 branch
    beta_scalar = 0.7                                               # beta > 0 branch
    ln_weight = 1.0 + 0.1 * jax.random.normal(kw, (hidden,), dtype=jnp.float32)
    ln_bias = 0.1 * jax.random.normal(kbias, (hidden,), dtype=jnp.float32)

    # 1) Exact path: f32 filter + f32 stats operands, learned per-channel beta.
    filt_f32 = make_lowpass_filter(seq_len, c_cut, dtype=jnp.float32)
    out_f32 = jax.block_until_ready(
        frequency_layer(x, filt_f32, beta_vec, ln_weight, ln_bias))
    ref_f32 = reference_frequency_layer(x, c_cut, beta_vec, ln_weight, ln_bias)
    assert out_f32.shape == x.shape and out_f32.dtype == x.dtype
    assert jnp.allclose(out_f32, ref_f32, rtol=1e-4, atol=1e-4), \
        "f32 path mismatch vs reference"

    # 2) Fast path: bf16 input / filter / stats operands / output (f32
    #    accumulation and f32 LayerNorm math inside), scalar-beta branch.
    filt_bf16 = make_lowpass_filter(seq_len, c_cut, dtype=jnp.bfloat16)
    out_bf16 = jax.block_until_ready(
        frequency_layer(x.astype(jnp.bfloat16), filt_bf16, beta_scalar,
                        ln_weight, ln_bias, out_dtype=jnp.bfloat16))
    ref_bf16 = reference_frequency_layer(x, c_cut, beta_scalar,
                                         ln_weight, ln_bias)
    assert out_bf16.dtype == jnp.bfloat16
    assert jnp.allclose(out_bf16.astype(jnp.float32), ref_bf16,
                        rtol=2e-2, atol=3e-2), "bf16 path mismatch vs reference"

    print("KERNEL_OK")
</pallas_src>

<mosaic_0001>
module attributes {stable_mosaic.version = 11 : i64} {
  func.func @_freq_ln_kernel(%arg0: i32, %arg1: memref<8x128xf32, #tpu.memory_space<vmem>>, %arg2: memref<8x8xf32, #tpu.memory_space<vmem>>, %arg3: memref<128x8xf32, #tpu.memory_space<vmem>>, %arg4: memref<8x128xf32, #tpu.memory_space<vmem>>, %arg5: memref<8x128xf32, #tpu.memory_space<vmem>>, %arg6: memref<8x128xf32, #tpu.memory_space<vmem>>) attributes {dimension_semantics = [#tpu.dimension_semantics<parallel>], iteration_bounds = array<i64: 1>, scalar_prefetch = 0 : i64, scratch_operands = 0 : i64, tpu.core_type = #tpu.core_type<tc>, window_params = [{transform_indices = @transform_0, window_bounds = array<i64: 8, 128>}, {pipeline_mode = #tpu.pipeline_mode<synchronous>, transform_indices = @transform_1, window_bounds = array<i64: 8, 8>}, {pipeline_mode = #tpu.pipeline_mode<synchronous>, transform_indices = @transform_2, window_bounds = array<i64: 128, 8>}, {pipeline_mode = #tpu.pipeline_mode<synchronous>, transform_indices = @transform_3, window_bounds = array<i64: 8, 128>}, {pipeline_mode = #tpu.pipeline_mode<synchronous>, transform_indices = @transform_4, window_bounds = array<i64: 8, 128>}, {transform_indices = @transform_5, window_bounds = array<i64: 8, 128>}]} {
    %c0 = arith.constant 0 : index
    %c0_0 = arith.constant 0 : index
    %0 = vector.load %arg1[%c0, %c0_0] : memref<8x128xf32, #tpu.memory_space<vmem>>, vector<8x128xf32>
    %c0_1 = arith.constant 0 : index
    %c0_2 = arith.constant 0 : index
    %1 = vector.load %arg2[%c0_1, %c0_2] : memref<8x8xf32, #tpu.memory_space<vmem>>, vector<8x8xf32>
    %cst = arith.constant dense<0.000000e+00> : vector<8x128xf32>
    %2 = tpu.matmul %1, %0, %cst {dimension_numbers = #tpu.dot_dimension_numbers<[1], [0], [0], [1], [0, 0, 1, 1], [], []>} : vector<8x8xf32>, vector<8x128xf32>, vector<8x128xf32> -> vector<8x128xf32>
    %c0_3 = arith.constant 0 : index
    %c0_4 = arith.constant 0 : index
    %3 = vector.load %arg5[%c0_3, %c0_4] : memref<8x128xf32, #tpu.memory_space<vmem>>, vector<1x128xf32>
    %c1 = arith.constant 1 : index
    %c0_5 = arith.constant 0 : index
    %4 = vector.load %arg5[%c1, %c0_5] : memref<8x128xf32, #tpu.memory_space<vmem>>, vector<1x128xf32>
    %c2 = arith.constant 2 : index
    %c0_6 = arith.constant 0 : index
    %5 = vector.load %arg5[%c2, %c0_6] : memref<8x128xf32, #tpu.memory_space<vmem>>, vector<1x128xf32>
    %c3 = arith.constant 3 : index
    %c0_7 = arith.constant 0 : index
    %6 = vector.load %arg5[%c3, %c0_7] : memref<8x128xf32, #tpu.memory_space<vmem>>, vector<1x128xf32>
    %7 = vector.broadcast %3 : vector<1x128xf32> to vector<8x128xf32>
    %8 = arith.mulf %7, %2 : vector<8x128xf32>
    %9 = vector.broadcast %4 : vector<1x128xf32> to vector<8x128xf32>
    %10 = arith.mulf %9, %0 : vector<8x128xf32>
    %11 = arith.addf %8, %10 : vector<8x128xf32>
    %12 = arith.mulf %11, %11 : vector<8x128xf32>
    %13 = tpu.concatenate %11, %12 in 0 : vector<8x128xf32>, vector<8x128xf32> -> vector<16x128xf32>
    %c0_8 = arith.constant 0 : index
    %c0_9 = arith.constant 0 : index
    %14 = vector.load %arg3[%c0_8, %c0_9] : memref<128x8xf32, #tpu.memory_space<vmem>>, vector<128x8xf32>
    %cst_10 = arith.constant dense<0.000000e+00> : vector<16x8xf32>
    %15 = tpu.matmul %13, %14, %cst_10 {dimension_numbers = #tpu.dot_dimension_numbers<[1], [0], [0], [1], [0, 0, 1, 1], [], []>} : vector<16x128xf32>, vector<128x8xf32>, vector<16x8xf32> -> vector<16x8xf32>
    %16 = vector.extract_strided_slice %15 {offsets = [0, 0], sizes = [8, 8], strides = [1, 1]} : vector<16x8xf32> to vector<8x8xf32>
    %17 = vector.extract_strided_slice %15 {offsets = [8, 0], sizes = [8, 8], strides = [1, 1]} : vector<16x8xf32> to vector<8x8xf32>
    %18 = arith.mulf %16, %16 : vector<8x8xf32>
    %19 = arith.subf %17, %18 : vector<8x8xf32>
    %cst_11 = arith.constant 0.000000e+00 : f32
    %20 = vector.broadcast %cst_11 : f32 to vector<8x8xf32>
    %21 = arith.maximumf %19, %20 : vector<8x8xf32>
    %cst_12 = arith.constant 9.99999996E-13 : f32
    %22 = vector.broadcast %cst_12 : f32 to vector<8x8xf32>
    %23 = arith.addf %21, %22 : vector<8x8xf32>
    %24 = math.rsqrt %23 : vector<8x8xf32>
    %25 = tpu.concatenate %16, %24 in 0 : vector<8x8xf32>, vector<8x8xf32> -> vector<16x8xf32>
    %c0_13 = arith.constant 0 : index
    %c0_14 = arith.constant 0 : index
    %26 = vector.load %arg4[%c0_13, %c0_14] : memref<8x128xf32, #tpu.memory_space<vmem>>, vector<8x128xf32>
    %cst_15 = arith.constant dense<0.000000e+00> : vector<16x128xf32>
    %27 = tpu.matmul %25, %26, %cst_15 {dimension_numbers = #tpu.dot_dimension_numbers<[1], [0], [0], [1], [0, 0, 1, 1], [], []>} : vector<16x8xf32>, vector<8x128xf32>, vector<16x128xf32> -> vector<16x128xf32>
    %28 = vector.extract_strided_slice %27 {offsets = [0, 0], sizes = [8, 128], strides = [1, 1]} : vector<16x128xf32> to vector<8x128xf32>
    %29 = vector.extract_strided_slice %27 {offsets = [8, 0], sizes = [8, 128], strides = [1, 1]} : vector<16x128xf32> to vector<8x128xf32>
    %30 = arith.subf %11, %28 : vector<8x128xf32>
    %31 = arith.mulf %30, %29 : vector<8x128xf32>
    %32 = vector.broadcast %5 : vector<1x128xf32> to vector<8x128xf32>
    %33 = arith.mulf %31, %32 : vector<8x128xf32>
    %34 = vector.broadcast %6 : vector<1x128xf32> to vector<8x128xf32>
    %35 = arith.addf %33, %34 : vector<8x128xf32>
    %c0_16 = arith.constant 0 : index
    %c0_17 = arith.constant 0 : index
    %36 = vector.load %arg6[%c0_16, %c0_17] : memref<8x128xf32, #tpu.memory_space<vmem>>, vector<8x128xf32>
    tpu.vector_store %arg6[%c0_16, %c0_17], %35 {strides = array<i32>} : memref<8x128xf32, #tpu.memory_space<vmem>>, vector<8x128xf32>,
    return
  }
  func.func @transform_0(%arg0: i32) -> (i32, i32) {
    %c0_i32 = arith.constant 0 : i32
    %c0_i32_0 = arith.constant 0 : i32
    return %c0_i32, %arg0 : i32, i32
  }
  func.func @transform_1(%arg0: i32) -> (i32, i32) {
    %c0_i32 = arith.constant 0 : i32
    %c0_i32_0 = arith.constant 0 : i32
    %c0_i32_1 = arith.constant 0 : i32
    return %c0_i32, %c0_i32_0 : i32, i32
  }
  func.func @transform_2(%arg0: i32) -> (i32, i32) {
    %c0_i32 = arith.constant 0 : i32
    %c0_i32_0 = arith.constant 0 : i32
    %c0_i32_1 = arith.constant 0 : i32
    return %c0_i32, %c0_i32_0 : i32, i32
  }
  func.func @transform_3(%arg0: i32) -> (i32, i32) {
    %c0_i32 = arith.constant 0 : i32
    %c0_i32_0 = arith.constant 0 : i32
    %c0_i32_1 = arith.constant 0 : i32
    return %c0_i32, %c0_i32_0 : i32, i32
  }
  func.func @transform_4(%arg0: i32) -> (i32, i32) {
    %c0_i32 = arith.constant 0 : i32
    %c0_i32_0 = arith.constant 0 : i32
    %c0_i32_1 = arith.constant 0 : i32
    return %c0_i32, %c0_i32_0 : i32, i32
  }
  func.func @transform_5(%arg0: i32) -> (i32, i32) {
    %c0_i32 = arith.constant 0 : i32
    %c0_i32_0 = arith.constant 0 : i32
    return %c0_i32, %arg0 : i32, i32
  }
}

</mosaic_0001>

<bundles_post_ra>
// kernel: tpu_custom_call.1
= control target key start
LH: loop header
LB: loop body
LE: loop exit
PB: predicated region body
PF: predicated region fallthrough
CT: control target
= control target key end

     0   :  { %v454_v2 = vmov 0.0   ;;  %vm455_vm0 = vmmov 0   ;;  %vm23_vm1 = vcmask 64512   ;;  %s571_s0 = inlined_call_operand.vmem [shape: f32[8,128], index: 0, kind: input, shape index: {}]   ;;  %s572_s1 = inlined_call_operand.vmem [shape: f32[8,8], index: 1, kind: input, shape index: {}]   ;;  %s573_s2 = inlined_call_operand.vmem [shape: f32[128,8], index: 2, kind: input, shape index: {}]   ;;  %s574_s3 = inlined_call_operand.vmem [shape: f32[8,128], index: 3, kind: input, shape index: {}]   ;;  %s575_s4 = inlined_call_operand.vmem [shape: f32[8,128], index: 4, kind: input, shape index: {}]   ;;  %s576_s5 = inlined_call_operand.hbm [shape: f32[8,128], index: 5, kind: output, shape index: {}]  }
   0x1   :  { %v21_v0 = vld [vmem:[%s571_s0] sm:$0xff]  ;;  %348 = vmatprep.subr.mxu0 %v454_v2  ;;  %350 = vmatprep.mubr.msk.f32.mxu0 %vm455_vm0, %v454_v2  ;;  %v114_v4 = vld [vmem:[%s573_s2 + $0x8] sm:$0xff]  ;;  %v115_v5 = vld [vmem:[%s573_s2 + $0x10] sm:$0xff] }
   0x2   :  { %v22_v1 = vld [vmem:[%s572_s1] sm:$0xff]  ;;  %349 = vmatpush3.msra.mxu0 %v21_v0  ;;  %v116_v7 = vld [vmem:[%s573_s2 + $0x18] sm:$0xff]  ;;  %v118_v10 = vld [vmem:[%s573_s2 + $0x28] sm:$0xff] }
   0x3   :  { %v113_v3 = vld [vmem:[%s573_s2] sm:$0xff]  ;;  %351 = vmatmul.mubr.msk.f32.vlgmr.msra.gmra.mrb[0].mxu0 %vm23_vm1, %v22_v1  ;;  %v397_v8 = vpack.c.bf16 %v116_v7, %v115_v5 }
   0x4   :  { %v393_v6 = vpack.c.bf16 %v114_v4, %v113_v3  ;;  %v117_v9 = vld [vmem:[%s573_s2 + $0x20] sm:$0xff] }
   0x6   :  { %394 = vmatprep.subr.bf16.mxu1 %v393_v6 }
   0x7   :  { %396 = vmatpush3.bf16.msra.mxu1 %v393_v6 }
   0x8   :  { %10 = vsyncpa [#allocation3], 0  ;;  %398 = vmatprep.subr.bf16.mxu1 %v397_v8  ;;  %v401_v11 = vpack.c.bf16 %v118_v10, %v117_v9  ;;  %v119_v12 = vld [vmem:[%s573_s2 + $0x30] sm:$0xff]  ;;  %v120_v13 = vld [vmem:[%s573_s2 + $0x38] sm:$0xff]  ;;  %s456_s8 = smov [#allocation2]  }
   0x9   :  { %v405_v14 = vpack.c.bf16 %v120_v13, %v119_v12  ;;  %v121_v15 = vld [vmem:[%s573_s2 + $0x40] sm:$0xff]  ;;  %v122_v16 = vld [vmem:[%s573_s2 + $0x48] sm:$0xff]  ;;  %v123_v18 = vld [vmem:[%s573_s2 + $0x50] sm:$0xff]  ;;  %s310_s9 = sshll.u32 %s456_s8, 4  ;;  %s311_s9 = int_to_ptr.vmem [resolvable:$true] %s310_s9 }
   0xa   :  { %v409_v17 = vpack.c.bf16 %v122_v16, %v121_v15  ;;  %v124_v19 = vld [vmem:[%s573_s2 + $0x58] sm:$0xff]  ;;  %v125_v21 = vld [vmem:[%s573_s2 + $0x60] sm:$0xff]  ;;  %v126_v22 = vld [vmem:[%s573_s2 + $0x68] sm:$0xff]  ;;  %s430_s10 = scalar_lea.vmem %s311_s9, 128  ;;  %p435_p1 = scmp.lt.s32.totalorder %s311_s9, %s311_s9 }
   0xb   :  { %400 = vmatpush3.bf16.msra.mxu1 %v397_v8  ;;  %v413_v20 = vpack.c.bf16 %v124_v19, %v123_v18  ;;  %v417_v23 = vpack.c.bf16 %v126_v22, %v125_v21  ;;  %v127_v24 = vld [vmem:[%s573_s2 + $0x70] sm:$0xff]  ;;  %v128_v25 = vld [vmem:[%s573_s2 + $0x78] sm:$0xff]  ;;  %v320_v27 = vld [vmem:[%s575_s4 + $0x1] ss:$0 sm:$0xff]  ;;  %p431_p0 = scmp.ne.s32.totalorder %s311_s9, %s430_s10  ;;  %p436_p2 = scmp.lt.s32.totalorder %s430_s10, %s430_s10 }
   0xc   :  { %402 = vmatprep.subr.bf16.mxu1 %v401_v11  ;;  %v421_v26 = vpack.c.bf16 %v128_v25, %v127_v24  ;;  %v319_v28 = vld [vmem:[%s575_s4] ss:$0 sm:$0xff]  ;;  %v110_v29 = vmul.f32 %v320_v27, %v21_v0  ;;  %v323_v46 = vld [vmem:[%s575_s4 + $0x2] ss:$0 sm:$0xff]  ;;  %v324_v48 = vld [vmem:[%s575_s4 + $0x3] ss:$0 sm:$0xff] }
   0xd   :  { %v209_v35 = vld [vmem:[%s574_s3] sm:$0xff]  ;;  %p437_p3 = por %p436_p2, %p435_p1 }
   0xe   :  { %388 = vmatprep.subr.mxu0 %v209_v35 }
   0xf   :  { %404 = vmatpush3.bf16.msra.mxu1 %v401_v11  ;;  %389 = vmatpush3.msra.mxu0 %v209_v35  ;;  %p438_p4 = pnand %p437_p3, %p431_p0 }
  0x10   :  { %406 = vmatprep.subr.bf16.mxu1 %v405_v14 }
  0x13   :  { %408 = vmatpush3.bf16.msra.mxu1 %v405_v14 }
  0x14   :  { %410 = vmatprep.subr.bf16.mxu1 %v409_v17 }
  0x17   :  { %412 = vmatpush3.bf16.msra.mxu1 %v409_v17 }
  0x18   :  { %414 = vmatprep.subr.bf16.mxu1 %v413_v20 }
  0x1b   :  { %416 = vmatpush3.bf16.msra.mxu1 %v413_v20 }
  0x1c   :  { %418 = vmatprep.subr.bf16.mxu1 %v417_v23 }
  0x1f   :  { %420 = vmatpush3.bf16.msra.mxu1 %v417_v23 }
  0x20   :  { %422 = vmatprep.subr.bf16.mxu1 %v421_v26 }
  0x23   :  { %424 = vmatpush3.bf16.msra.mxu1 %v421_v26 }
  0xd6   :  { %v93_v30 = vpop.f32.mrb[0].mxu0 }
  0xd7   :  { %v105_v31 = vmul.f32 %v319_v28, %v93_v30  ;;  %v352_v32 = vpop.f32.mrb[1].mxu0 }
  0xd9   :  { %v111_v33 = vadd.f32 %v110_v29, %v105_v31 }
  0xdb   :  { %385 = vmatprep.mubr.f32.mxu1 %v111_v33  ;;  %v112_v34 = vmul.f32 %v111_v33, %v111_v33 }
  0xdd   :  { %386 = vmatmul.mubr.f32.vlgmr.msra.gmra.mrb[0].mxu1 %v112_v34 }
 0x1b0   :  { %v387_v36 = vpop.f32.mrb[0].mxu1 }
 0x1b1   :  { %v195_v37 = vpop.f32.mrb[1].mxu1 }
 0x1b2   :  { %v204_v38 = vmul.f32 %v195_v37, %v195_v37  ;;  %390 = vmatprep.mubr.msk.f32.mxu0 %vm23_vm1, %v195_v37 }
 0x1b4   :  { %v205_v39 = vsub.f32 %v387_v36, %v204_v38 }
 0x1b6   :  { %v206_v40 = vmax.f32 %v205_v39, 0.0 }
 0x1b8   :  { %v207_v41 = vadd.f32 1e-12, %v206_v40 }
 0x1ba   :  { %428 = vrsqrt.f32 %v207_v41 }
 0x1c4   :  { %v429_v42 = vpop.eup %428 }
 0x1c5   :  { %391 = vmatmul.mubr.msk.f32.vlgmr.msra.gmra.mrb[2].mxu0 %vm23_vm1, %v429_v42 }
 0x298   :  { %v392_v43 = vpop.f32.mrb[2].mxu0 }
 0x299   :  { %v282_v44 = vpop.f32.mrb[3].mxu0 }
 0x29a   :  { %v291_v45 = vsub.f32 %v111_v33, %v282_v44 }
 0x29c   :  { %v292_v47 = vmul.f32 %v392_v43, %v291_v45 }
 0x29e   :  { %v297_v49 = vmul.f32 %v323_v46, %v292_v47 }
 0x2a0   :  { %v302_v50 = vadd.f32 %v324_v48, %v297_v49 }
 0x2a2   :  { %303 = vst [vmem:[#allocation2] sm:$0xff] %v302_v50 }
 0x2a3   :  { %441 = shalt.err (!%p438_p4)
}
 0x2a4   :  { %s442_s13 = scalar_lea.hbm %s576_s5, 128 }
 0x2a5   :  { %p443_p5 = scmp.ne.s32.totalorder %s576_s5, %s442_s13  ;;  %p446_p6 = scmp.lt.u32.totalorder %s442_s13, %s576_s5 }
 0x2a7   :  { %p448_p7 = pnand %p446_p6, %p443_p5 }
 0x2a9   :  { %451 = shalt.err (!%p448_p7)
}
 0x2aa   :  { %313 = dma.vmem_to_hbm [thread:$0]  %s311_s9, 128, %s576_s5, [#allocation3]  }
 0x2ab   :  { %452 = dma.done.wait [#allocation3], 128  }
 0x2ac   :  { %453 = vsyncadd [#allocation3], 4294967168 }
 0x2ad   :  { %317 = vsyncpa [#allocation3], 1 }

</bundles_post_ra>
